<compile_context>
chip_gen: v7x
topology: tpu7x:2x2x1
jax: 0.10.0
libtpu: 0.0.40
codegen_flags: <defaults>
</compile_context>

<pallas_src>
import collections
import functools
import math

import jax
import jax.numpy as jnp
from jax.experimental import pallas as pl
from jax.experimental.pallas import tpu as pltpu

LANE = 128      # TPU lane width; all channel dims are zero-padded to a multiple of this
SE_PAD = 128    # squeeze channels padded to one lane tile
_MiB = 1024 * 1024
_VMEM_CAP = None


# ----------------------------------------------------------------------------- helpers
def _ceil_to(a, b):
    return -(-a // b) * b


def _pad_c(c):
    return _ceil_to(c, LANE)


def _same_pad(size, k, s):
    out = -(-size // s)
    pad = max((out - 1) * s + k - size, 0)
    return pad // 2, pad - pad // 2


def _vmem_cap_bytes():
    """Physical per-core VMEM (v5e/v6e: 128 MiB, v7x: 64 MiB); conservative fallback."""
    global _VMEM_CAP
    if _VMEM_CAP is None:
        try:
            _VMEM_CAP = int(pltpu.get_tpu_info().vmem_capacity_bytes)
        except Exception:
            _VMEM_CAP = 64 * _MiB
    return _VMEM_CAP


def _mosaic_params(sems, working_bytes):
    """dimension_semantics + explicit vmem_limit_bytes sized from the block working set,
    raised toward physical VMEM (~108 MiB on v5e/v6e, ~54 MiB on v7x)."""
    limit = int(min(int(_vmem_cap_bytes() * 0.85),
                    max(32 * _MiB, int(working_bytes) + 4 * _MiB)))
    return pltpu.CompilerParams(dimension_semantics=sems, vmem_limit_bytes=limit)


def _choose_m_tile(m, cap=512):
    """Largest M tile <= cap, with M padded up to a tile multiple.  Never collapses to tiny
    tiles at awkward M (pad overhead is bounded by one tile)."""
    m8 = _ceil_to(max(m, 1), 8)
    if m8 <= cap:
        return m8, m8
    n = -(-m8 // cap)
    tm = _ceil_to(-(-m8 // n), 8)
    return tm, tm * n


def _choose_h_tile(ho, cap=64):
    """H-row tile for the stride-1 depthwise kernels (bounds VMEM at real B4 resolutions)."""
    if ho <= cap:
        return ho, 1
    n_h = -(-ho // cap)
    th = _ceil_to(-(-ho // n_h), 8)
    return th, n_h


# ----------------------------------------------------------------------------- 1x1 conv matmul
def _mm_kernel(a_ref, b_ref, bias_ref, o_ref, *, act):
    acc = jnp.dot(a_ref[...], b_ref[...], preferred_element_type=jnp.float32)
    acc = acc + bias_ref[...]
    if act == "swish":
        acc = acc * jax.nn.sigmoid(acc)
    o_ref[...] = acc.astype(o_ref.dtype)


def matmul_bias_act(a, b, bias, act="none"):
    """(M, K) @ (K, Np) + bias [swish].  a/b bf16, bias f32, Np % 128 == 0 (pre-padded).
    The full (K, Np) weight stays resident (Np <= 1024 in this net) so the MXU gets the whole
    output width (good for v6e/v7x 2x256^2 MXUs) and the weight is DMA'd exactly once."""
    M, K = a.shape
    Np = b.shape[1]
    tm, Mp = _choose_m_tile(M)
    if Mp != M:
        a = jnp.pad(a, ((0, Mp - M), (0, 0)))
    work = 2 * 2 * (tm * K + K * Np + tm * Np) + 4 * tm * Np
    out = pl.pallas_call(
        functools.partial(_mm_kernel, act=act),
        out_shape=jax.ShapeDtypeStruct((Mp, Np), jnp.bfloat16),
        grid=(Mp // tm,),
        in_specs=[
            pl.BlockSpec((tm, K), lambda i: (i, 0)),
            pl.BlockSpec((K, Np), lambda i: (0, 0)),     # full weight resident
            pl.BlockSpec((1, Np), lambda i: (0, 0)),
        ],
        out_specs=pl.BlockSpec((tm, Np), lambda i: (i, 0)),
        compiler_params=_mosaic_params(("parallel",), work),
    )(a, b, bias)
    return out[:M] if Mp != M else out


def conv1x1_bn_act(x, w, b, act):
    N, H, W, _ = x.shape
    out = matmul_bias_act(x.reshape(N * H * W, x.shape[3]), w, b, act=act)
    return out.reshape(N, H, W, w.shape[1])


# ----------------------------------------------------------------------------- depthwise + SE pool
def _dw_s1_kernel(x_ref, w_ref, b_ref, o_ref, pool_ref, *, k, th, ho_real, mask_rows):
    # x: (1, 1, th+k-1, Wp, ct) bf16 halo window; w: (k, k, ct) f32; b: (1, ct) f32
    # o: (1, th, Wo, ct) bf16; pool: (1, 1, ct) f32, accumulated across the H-tile grid axis.
    h = pl.program_id(2)
    wo = o_ref.shape[2]
    x = x_ref[0, 0]                                        # (th+k-1, Wp, ct)
    acc = jnp.zeros(o_ref.shape[1:], jnp.float32)
    # TODO(synk): check with a bundle dump whether the f32 acc round-trips VMEM per tap; if so,
    #             restructure to row-slab-outer / taps-inner accumulation.
    for kw in range(k):
        xk = x[:, kw:kw + wo, :]                           # one unaligned W window per kw
        for kh in range(k):
            acc = acc + xk[kh:kh + th].astype(jnp.float32) * w_ref[kh, kw, :]
    acc = acc + b_ref[0, :]
    y = acc * jax.nn.sigmoid(acc)                          # folded-BN bias + swish
    o_ref[0] = y.astype(o_ref.dtype)

    # SE pool contribution: reduce W first, mask padded rows (only present in the last H tile).
    ysum_w = jnp.sum(y, axis=1)                            # (th, ct)
    if mask_rows:
        rid = jax.lax.broadcasted_iota(jnp.int32, ysum_w.shape, 0) + h * th
        ysum_w = jnp.where(rid < ho_real, ysum_w, 0.0)
    contrib = jnp.sum(ysum_w, axis=0, keepdims=True)       # (1, ct)

    @pl.when(h == 0)
    def _():
        pool_ref[...] = jnp.zeros_like(pool_ref)

    pool_ref[...] += contrib.reshape(1, 1, -1)

    @pl.when(h == pl.num_programs(2) - 1)
    def _():
        pool_ref[...] = pool_ref[...] * (1.0 / (ho_real * wo))


def _dw_s2_kernel(xe_ref, xo_ref, w_ref, b_ref, o_ref, pool_ref, *, k):
    # xe/xo: (1, Hh, 2, Wr, ct) bf16 -- even/odd-column parity split, H stride folded into the
    # (Hh, 2) leading dims.  o: (1, Ho, Wo, ct); pool: (1, 1, ct).  Stride handled in-kernel.
    ho, wo = o_ref.shape[1], o_ref.shape[2]
    acc = jnp.zeros(o_ref.shape[1:], jnp.float32)
    for kw in range(k):
        src = xe_ref if kw % 2 == 0 else xo_ref
        sh = kw // 2
        xs = src[0, :, :, sh:sh + wo, :]                   # hoisted unaligned W window per kw
        for kh in range(k):
            rows = xs[kh // 2:kh // 2 + ho, kh % 2]        # leading-dim selections -> free
            acc = acc + rows.astype(jnp.float32) * w_ref[kh, kw, :]
    acc = acc + b_ref[0, :]
    y = acc * jax.nn.sigmoid(acc)
    o_ref[0] = y.astype(o_ref.dtype)
    pool_ref[...] = jnp.sum(y, axis=(0, 1), keepdims=True) * (1.0 / (ho * wo))


def dwconv_se_pool(x, w, b, k, stride):
    """Depthwise KxK conv ('same' pad, stride in-kernel), folded BN, swish, with the SE
    global-average-pool fused into the kernel epilogue.  Returns (y, pooled_means)."""
    N, H, W, C = x.shape
    ph0, ph1 = _same_pad(H, k, stride)
    pw0, pw1 = _same_pad(W, k, stride)
    Ho, Wo = -(-H // stride), -(-W // stride)
    ct = LANE
    pool_shape = jax.ShapeDtypeStruct((N, 1, C), jnp.float32)

    if stride == 1:
        # H-row tiling with a (k-1)-row halo bounds VMEM at real B4 resolutions; the SE pool is
        # accumulated across the (innermost, 'arbitrary') H-tile axis.
        th, n_h = _choose_h_tile(Ho)
        Ho_p = th * n_h
        Hp = Ho_p + k - 1
        Wp = W + pw0 + pw1
        xp = jnp.pad(x, ((0, 0), (ph0, Hp - H - ph0), (pw0, pw1), (0, 0)))
        if n_h == 1:
            xw = xp[:, None]
        else:
            # Overlapping halo windows (replaces -- not adds to -- the old full-image pad copy).
            xw = jnp.stack([xp[:, i * th:i * th + th + k - 1] for i in range(n_h)], axis=1)
        work = (2 * ((th + k - 1) * Wp + th * Wo) * ct * 2      # in/out double-buffered (bf16)
                + th * Wo * ct * 4                              # f32 accumulator
                + k * (th + k - 1) * Wo * ct * 2)               # hoisted W-window copies
        out, pool = pl.pallas_call(
            functools.partial(_dw_s1_kernel, k=k, th=th, ho_real=Ho,
                              mask_rows=(Ho_p != Ho)),
            out_shape=(jax.ShapeDtypeStruct((N, Ho_p, Wo, C), jnp.bfloat16), pool_shape),
            grid=(N, C // ct, n_h),
            in_specs=[
                pl.BlockSpec((1, 1, th + k - 1, Wp, ct), lambda n, c, h: (n, h, 0, 0, c)),
                pl.BlockSpec((k, k, ct), lambda n, c, h: (0, 0, c)),
                pl.BlockSpec((1, ct), lambda n, c, h: (0, c)),
            ],
            out_specs=(
                pl.BlockSpec((1, th, Wo, ct), lambda n, c, h: (n, h, 0, c)),
                pl.BlockSpec((1, 1, ct), lambda n, c, h: (n, 0, c)),
            ),
            compiler_params=_mosaic_params(("parallel", "parallel", "arbitrary"), work),
        )(xw, w, b)
        if Ho_p != Ho:
            out = out[:, :Ho]
    else:  # stride == 2
        # Fold the spatial stride into the layout with a free row-major parity split:
        # (N,Hp,Wp,C) -> even/odd-column arrays (N,Hp/2,2,Wp/2,C).  Strided taps become
        # contiguous leading-dim (H) selections and the output is written directly at the
        # strided resolution.  Channel tiling gives parallel grid work even at small batch.
        Hp = _ceil_to(H + ph0 + ph1, 2)
        Wp = _ceil_to(W + pw0 + pw1, 2)
        Hh, Wr = Hp // 2, Wp // 2
        xp = jnp.pad(x, ((0, 0), (ph0, Hp - H - ph0), (pw0, Wp - W - pw0), (0, 0)))
        xr = xp.reshape(N, Hh, 2, Wr, 2, C)
        xe, xo = xr[:, :, :, :, 0, :], xr[:, :, :, :, 1, :]
        work = (2 * (2 * Hh * 2 * Wr + Ho * Wo) * ct * 2
                + Ho * Wo * ct * 4
                + k * Hh * 2 * Wo * ct * 2)
        out, pool = pl.pallas_call(
            functools.partial(_dw_s2_kernel, k=k),
            out_shape=(jax.ShapeDtypeStruct((N, Ho, Wo, C), jnp.bfloat16), pool_shape),
            grid=(N, C // ct),
            in_specs=[
                pl.BlockSpec((1, Hh, 2, Wr, ct), lambda n, c: (n, 0, 0, 0, c)),
                pl.BlockSpec((1, Hh, 2, Wr, ct), lambda n, c: (n, 0, 0, 0, c)),
                pl.BlockSpec((k, k, ct), lambda n, c: (0, 0, c)),
                pl.BlockSpec((1, ct), lambda n, c: (0, c)),
            ],
            out_specs=(
                pl.BlockSpec((1, Ho, Wo, ct), lambda n, c: (n, 0, 0, c)),
                pl.BlockSpec((1, 1, ct), lambda n, c: (n, 0, c)),
            ),
            compiler_params=_mosaic_params(("parallel", "parallel"), work),
        )(xe, xo, w, b)
    return out, pool


# ----------------------------------------------------------------------------- SE gate + projection
def _proj_se_body(x_ref, pool_ref, w1_ref, b1_ref, w2_ref, b2_ref, wp_ref, bp_ref, r_ref, o_ref):
    # SE gate from the pre-pooled per-sample channel means (computed by the depthwise kernel),
    # then gated 1x1 projection (+ optional residual) in one matmul pass over an M-row tile.
    p = pool_ref[0]                                                     # (1, C) f32
    h = jnp.dot(p, w1_ref[...], preferred_element_type=jnp.float32) + b1_ref[...]
    h = h * jax.nn.sigmoid(h)
    g = jnp.dot(h, w2_ref[...], preferred_element_type=jnp.float32) + b2_ref[...]
    gate = jax.nn.sigmoid(g)                                            # (1, C)
    a = (x_ref[0].astype(jnp.float32) * gate).astype(jnp.bfloat16)      # (tm, C)
    acc = jnp.dot(a, wp_ref[...], preferred_element_type=jnp.float32) + bp_ref[...]
    if r_ref is not None:
        acc = acc + r_ref[0].astype(jnp.float32)
    o_ref[0] = acc.astype(o_ref.dtype)


def _proj_se_kernel(x_ref, pool_ref, w1_ref, b1_ref, w2_ref, b2_ref, wp_ref, bp_ref, o_ref):
    _proj_se_body(x_ref, pool_ref, w1_ref, b1_ref, w2_ref, b2_ref, wp_ref, bp_ref, None, o_ref)


def _proj_se_res_kernel(x_ref, pool_ref, w1_ref, b1_ref, w2_ref, b2_ref, wp_ref, bp_ref,
                        r_ref, o_ref):
    _proj_se_body(x_ref, pool_ref, w1_ref, b1_ref, w2_ref, b2_ref, wp_ref, bp_ref, r_ref, o_ref)


def proj_se(x, pool, p, residual=None):
    """SE gate (from fused pooled means) + 1x1 projection (+ residual), single pallas_call.
    Tiled over spatial rows (M); the full Cout weight is resident, so the gate and the gating
    multiply are computed once per M tile (no per-output-column redundancy)."""
    N, Ho, Wo, C = x.shape
    M = Ho * Wo
    cout = p["proj_w"].shape[1]
    tm, Mp = _choose_m_tile(M)
    xr = x.reshape(N, M, C)
    res = None if residual is None else residual.reshape(N, M, cout)
    if Mp != M:
        xr = jnp.pad(xr, ((0, 0), (0, Mp - M), (0, 0)))
        if res is not None:
            res = jnp.pad(res, ((0, 0), (0, Mp - M), (0, 0)))
    in_specs = [
        pl.BlockSpec((1, tm, C), lambda n, m: (n, m, 0)),
        pl.BlockSpec((1, 1, C), lambda n, m: (n, 0, 0)),
        pl.BlockSpec(p["se_w1"].shape, lambda n, m: (0, 0)),
        pl.BlockSpec((1, SE_PAD), lambda n, m: (0, 0)),
        pl.BlockSpec(p["se_w2"].shape, lambda n, m: (0, 0)),
        pl.BlockSpec((1, C), lambda n, m: (0, 0)),
        pl.BlockSpec((C, cout), lambda n, m: (0, 0)),      # full projection weight resident
        pl.BlockSpec((1, cout), lambda n, m: (0, 0)),
    ]
    args = [xr, pool, p["se_w1"], p["se_b1"], p["se_w2"], p["se_b2"],
            p["proj_w"], p["proj_b"]]
    if res is not None:
        in_specs.append(pl.BlockSpec((1, tm, cout), lambda n, m: (n, m, 0)))
        args.append(res)
        kernel = _proj_se_res_kernel
    else:
        kernel = _proj_se_kernel
    work = 2 * 2 * (tm * C + C * cout + 2 * tm * cout) + 4 * tm * cout + 8 * C * SE_PAD
    out = pl.pallas_call(
        kernel,
        out_shape=jax.ShapeDtypeStruct((N, Mp, cout), jnp.bfloat16),
        grid=(N, Mp // tm),
        in_specs=in_specs,
        out_specs=pl.BlockSpec((1, tm, cout), lambda n, m: (n, m, 0)),
        compiler_params=_mosaic_params(("parallel", "parallel"), work),
    )(*args)
    if Mp != M:
        out = out[:, :M]
    return out.reshape(N, Ho, Wo, cout)


# ----------------------------------------------------------------------------- network pieces
@functools.partial(jax.jit, static_argnames=("k", "stride"))
def stem_forward(x, w, b, *, k=3, stride=2):
    """3x3 s2 conv (same pad) + folded-BN + swish, im2col + lane-dense bf16 Pallas matmul."""
    # TODO(synk): im2col patches are materialized in XLA (runs once on a tiny 3-channel tensor).
    N, H, W, Cin = x.shape
    ph0, ph1 = _same_pad(H, k, stride)
    pw0, pw1 = _same_pad(W, k, stride)
    xp = jnp.pad(x, ((0, 0), (ph0, ph1), (pw0, pw1), (0, 0)))
    Ho, Wo = -(-H // stride), -(-W // stride)
    cols = []
    for kh in range(k):
        for kw in range(k):
            cols.append(xp[:, kh:kh + stride * (Ho - 1) + 1:stride,
                           kw:kw + stride * (Wo - 1) + 1:stride, :])
    patches = jnp.stack(cols, axis=3).reshape(N * Ho * Wo, k * k * Cin)
    a = jnp.pad(patches.astype(jnp.bfloat16), ((0, 0), (0, w.shape[0] - k * k * Cin)))
    out = matmul_bias_act(a, w, b, act="swish")
    return out.reshape(N, Ho, Wo, w.shape[1])


@functools.partial(jax.jit, static_argnames=("cfg",))
def mbconv_forward(x, p, *, cfg):
    use_res = (cfg.stride == 1 and cfg.in_ch == cfg.out_ch)
    h = x
    if cfg.expand != 1:
        h = conv1x1_bn_act(x, p["expand_w"], p["expand_b"], act="swish")
    dw, pool = dwconv_se_pool(h, p["dw_w"], p["dw_b"], cfg.k, cfg.stride)
    return proj_se(dw, pool, p, residual=x if use_res else None)


# ----------------------------------------------------------------------------- B4 config & params
BlockCfg = collections.namedtuple("BlockCfg", ["in_ch", "out_ch", "k", "stride", "expand", "se"])


def b4_block_cfgs():
    # EfficientNet-B4 stages 1-5 (only blocks 0..21 are needed for features[5,9,21]).
    stages = [  # (repeats, kernel, stride, expand, in_ch, out_ch)
        (2, 3, 1, 1, 48, 24),
        (4, 3, 2, 6, 24, 32),
        (4, 5, 2, 6, 32, 56),
        (6, 3, 2, 6, 56, 112),
        (6, 5, 1, 6, 112, 160),
    ]
    cfgs = []
    for r, k, s, e, ci, co in stages:
        for i in range(r):
            cin = ci if i == 0 else co
            cfgs.append(BlockCfg(cin, co, k, s if i == 0 else 1, e, max(1, int(cin * 0.25))))
    return tuple(cfgs)   # 22 blocks: indices 0..21


def _conv_bn_fold(key, cin_g, cout, k):
    """Deterministic conv weight + eval-BN params, folded into (weight, bias)."""
    kw, kg, kb, km, kv = jax.random.split(key, 5)
    fan_in = cin_g * k * k
    w = jax.random.normal(kw, (cout, cin_g, k, k), jnp.float32) * math.sqrt(1.0 / fan_in)
    gamma = 1.0 + 0.05 * jax.random.normal(kg, (cout,), jnp.float32)
    beta = 0.02 * jax.random.normal(kb, (cout,), jnp.float32)
    mean = 0.02 * jax.random.normal(km, (cout,), jnp.float32)
    var = 1.0 + 0.1 * jax.random.uniform(kv, (cout,), jnp.float32)
    scale = gamma / jnp.sqrt(var + 1e-3)      # BN eps = 1e-3 (EfficientNet default)
    return w * scale[:, None, None, None], beta - scale * mean


def _pad_mat(m, rows, cols):
    return jnp.pad(m, ((0, rows - m.shape[0]), (0, cols - m.shape[1])))


def _pad_vec(v, n):
    return jnp.pad(v, (0, n - v.shape[0])).reshape(1, n)


def init_block_params(key, cfg):
    cexp = cfg.in_ch * cfg.expand
    cin_p, cexp_p, cout_p = _pad_c(cfg.in_ch), _pad_c(cexp), _pad_c(cfg.out_ch)
    keys = jax.random.split(key, 4)
    p = {}
    if cfg.expand != 1:
        w, b = _conv_bn_fold(keys[0], cfg.in_ch, cexp, 1)
        p["expand_w"] = _pad_mat(jnp.transpose(w[:, :, 0, 0]), cin_p, cexp_p).astype(jnp.bfloat16)
        p["expand_b"] = _pad_vec(b, cexp_p)
    w, b = _conv_bn_fold(keys[1], 1, cexp, cfg.k)            # depthwise (groups = Cexp)
    p["dw_w"] = jnp.pad(jnp.transpose(w[:, 0], (1, 2, 0)), ((0, 0), (0, 0), (0, cexp_p - cexp)))
    p["dw_b"] = _pad_vec(b, cexp_p)
    kse = jax.random.split(keys[2], 4)
    s = cfg.se
    w1 = jax.random.normal(kse[0], (s, cexp, 1, 1), jnp.float32) * math.sqrt(1.0 / cexp)
    b1 = 0.02 * jax.random.normal(kse[1], (s,), jnp.float32)
    w2 = jax.random.normal(kse[2], (cexp, s, 1, 1), jnp.float32) * math.sqrt(1.0 / s)
    b2 = 0.02 * jax.random.normal(kse[3], (cexp,), jnp.float32)
    p["se_w1"] = _pad_mat(jnp.transpose(w1[:, :, 0, 0]), cexp_p, SE_PAD)   # (Cexp_p, Sp)
    p["se_b1"] = _pad_vec(b1, SE_PAD)
    p["se_w2"] = _pad_mat(jnp.transpose(w2[:, :, 0, 0]), SE_PAD, cexp_p)   # (Sp, Cexp_p)
    p["se_b2"] = _pad_vec(b2, cexp_p)
    w, b = _conv_bn_fold(keys[3], cexp, cfg.out_ch, 1)
    p["proj_w"] = _pad_mat(jnp.transpose(w[:, :, 0, 0]), cexp_p, cout_p).astype(jnp.bfloat16)
    p["proj_b"] = _pad_vec(b, cout_p)
    return p


def init_params(key):
    cfgs = b4_block_cfgs()
    keys = jax.random.split(key, len(cfgs) + 1)
    stem_w, stem_b = _conv_bn_fold(keys[0], 3, 48, 3)
    w2d = jnp.transpose(stem_w, (2, 3, 1, 0)).reshape(3 * 3 * 3, 48)
    params = {
        "stem_w": _pad_mat(w2d, LANE, _pad_c(48)).astype(jnp.bfloat16),
        "stem_b": _pad_vec(stem_b, _pad_c(48)),
        "blocks": [init_block_params(keys[i + 1], c) for i, c in enumerate(cfgs)],
    }
    return params, cfgs


def efficientnet_b4_features(x_nchw, params, cfgs):
    """Returns [features[5], features[9], features[21]] in NCHW float32, like the PyTorch module."""
    x = jnp.transpose(x_nchw, (0, 2, 3, 1)).astype(jnp.float32)   # NCHW -> NHWC
    x = stem_forward(x, params["stem_w"], params["stem_b"], k=3, stride=2)
    want = (5, 9, 21)
    feats = {}
    for i, (cfg, bp) in enumerate(zip(cfgs, params["blocks"])):
        x = mbconv_forward(x, bp, cfg=cfg)
        if i in want:
            feats[i] = x
        if i == max(want):
            break
    # strip channel padding, cast back to f32, NHWC -> NCHW
    return [jnp.transpose(feats[i][..., :cfgs[i].out_ch].astype(jnp.float32), (0, 3, 1, 2))
            for i in want]


# ----------------------------------------------------------------------------- main
if __name__ == "__main__":
    key = jax.random.PRNGKey(0)
    pkey, xkey = jax.random.split(key)
    params, cfgs = init_params(pkey)

    # Small RGB batch (NCHW, like the PyTorch module's input).  144x144 is small, but large
    # enough that the H-tiled depthwise path (halo windows + pool accumulation + row masking)
    # is exercised in the first two blocks (post-stem Ho = 72 > 64).
    x = jax.random.normal(xkey, (2, 3, 144, 144), jnp.float32)

    f2, f3, f4 = efficientnet_b4_features(x, params, cfgs)
    jax.block_until_ready((f2, f3, f4))

    assert f2.shape == (2, 32, 36, 36), f2.shape    # block 5  (stage 2, stride 4)
    assert f3.shape == (2, 56, 18, 18), f3.shape    # block 9  (stage 3, stride 8)
    assert f4.shape == (2, 160, 9, 9), f4.shape     # block 21 (stage 5, stride 16)
    assert all(bool(jnp.all(jnp.isfinite(f))) for f in (f2, f3, f4))

    print("KERNEL_OK")
</pallas_src>

<mosaic_0001>
module attributes {stable_mosaic.version = 11 : i64} {
  func.func @_mm_kernel(%arg0: i32, %arg1: memref<496x128xbf16, #tpu.memory_space<vmem>>, %arg2: memref<128x128xbf16, #tpu.memory_space<vmem>>, %arg3: memref<1x128xf32, #tpu.memory_space<vmem>>, %arg4: memref<496x128xbf16, #tpu.memory_space<vmem>>) attributes {dimension_semantics = [#tpu.dimension_semantics<parallel>], iteration_bounds = array<i64: 21>, scalar_prefetch = 0 : i64, scratch_operands = 0 : i64, tpu.core_type = #tpu.core_type<tc>, window_params = [{transform_indices = @transform_0, window_bounds = array<i64: 496, 128>}, {pipeline_mode = #tpu.pipeline_mode<synchronous>, transform_indices = @transform_1, window_bounds = array<i64: 128, 128>}, {pipeline_mode = #tpu.pipeline_mode<synchronous>, transform_indices = @transform_2, window_bounds = array<i64: 1, 128>}, {transform_indices = @transform_3, window_bounds = array<i64: 496, 128>}]} {
    %c0 = arith.constant 0 : index
    %c0_0 = arith.constant 0 : index
    %0 = vector.load %arg1[%c0, %c0_0] : memref<496x128xbf16, #tpu.memory_space<vmem>>, vector<496x128xbf16>
    %c0_1 = arith.constant 0 : index
    %c0_2 = arith.constant 0 : index
    %1 = vector.load %arg2[%c0_1, %c0_2] : memref<128x128xbf16, #tpu.memory_space<vmem>>, vector<128x128xbf16>
    %cst = arith.constant dense<0.000000e+00> : vector<496x128xf32>
    %2 = tpu.matmul %0, %1, %cst {dimension_numbers = #tpu.dot_dimension_numbers<[1], [0], [0], [1], [0, 0, 1, 1], [], []>} : vector<496x128xbf16>, vector<128x128xbf16>, vector<496x128xf32> -> vector<496x128xf32>
    %c0_3 = arith.constant 0 : index
    %c0_4 = arith.constant 0 : index
    %3 = vector.load %arg3[%c0_3, %c0_4] : memref<1x128xf32, #tpu.memory_space<vmem>>, vector<1x128xf32>
    %4 = vector.broadcast %3 : vector<1x128xf32> to vector<496x128xf32>
    %5 = arith.addf %2, %4 : vector<496x128xf32>
    %6 = arith.negf %5 : vector<496x128xf32>
    %7 = math.exp %6 : vector<496x128xf32>
    %cst_5 = arith.constant 1.000000e+00 : f32
    %8 = vector.broadcast %cst_5 : f32 to vector<496x128xf32>
    %9 = arith.addf %8, %7 : vector<496x128xf32>
    %10 = arith.divf %8, %9 : vector<496x128xf32>
    %11 = arith.mulf %5, %10 : vector<496x128xf32>
    %12 = arith.truncf %11 : vector<496x128xf32> to vector<496x128xbf16>
    %c0_6 = arith.constant 0 : index
    %c0_7 = arith.constant 0 : index
    %13 = vector.load %arg4[%c0_6, %c0_7] : memref<496x128xbf16, #tpu.memory_space<vmem>>, vector<496x128xbf16>
    tpu.vector_store %arg4[%c0_6, %c0_7], %12 {strides = array<i32>} : memref<496x128xbf16, #tpu.memory_space<vmem>>, vector<496x128xbf16>,
    return
  }
  func.func @transform_0(%arg0: i32) -> (i32, i32) {
    %c0_i32 = arith.constant 0 : i32
    %c0_i32_0 = arith.constant 0 : i32
    return %arg0, %c0_i32 : i32, i32
  }
  func.func @transform_1(%arg0: i32) -> (i32, i32) {
    %c0_i32 = arith.constant 0 : i32
    %c0_i32_0 = arith.constant 0 : i32
    %c0_i32_1 = arith.constant 0 : i32
    return %c0_i32, %c0_i32_0 : i32, i32
  }
  func.func @transform_2(%arg0: i32) -> (i32, i32) {
    %c0_i32 = arith.constant 0 : i32
    %c0_i32_0 = arith.constant 0 : i32
    %c0_i32_1 = arith.constant 0 : i32
    return %c0_i32, %c0_i32_0 : i32, i32
  }
  func.func @transform_3(%arg0: i32) -> (i32, i32) {
    %c0_i32 = arith.constant 0 : i32
    %c0_i32_0 = arith.constant 0 : i32
    return %arg0, %c0_i32 : i32, i32
  }
}

</mosaic_0001>

<bundles_post_ra>
// kernel: stem_forward.1
= control target key start
LH: loop header
LB: loop body
LE: loop exit
PB: predicated region body
PF: predicated region fallthrough
CT: control target
= control target key end

     0   :  { %s2518_s12 = smov 0   ;;  %s3030_s0 = inlined_call_operand.vmem [shape: bf16[10416,128], index: 0, kind: input, shape index: {}]   ;;  %s3031_s1 = inlined_call_operand.vmem [shape: bf16[128,128], index: 1, kind: input, shape index: {}]   ;;  %s3032_s2 = inlined_call_operand.vmem [shape: f32[1,128], index: 2, kind: input, shape index: {}]   ;;  %s3033_s3 = inlined_call_operand.vmem [shape: bf16[10416,128], index: 3, kind: output, shape index: {}]  }
   0x1 LB: > { %s1575_s13 = sadd.s32 4294967295, %s2494_s12   ;;  %p1579_p0 = scmp.ge.s32.totalorder %s2494_s12, 1  ;;  %s2494_s12 = sphi %s2518_s12, %s13_s12  }
   0x2   : > { %p138_p1 = scmp.lt.s32.totalorder %s2494_s12, 22 }
   0x4   : > { %p139_p2 = pnand %p1579_p0, %p138_p1 }
   0x5   : > { %v2200_v0 = vld [vmem:[%s3031_s1] sm:$0xff] (!%p139_p2)   ;;  %v2496_v1 = vmov (!%p139_p2), 0.0   ;;  %v2201_v2 = vld [vmem:[%s3031_s1 + $0x8] sm:$0xff] (!%p139_p2)   ;;  %s162_s18 = smul.u32 (!%p139_p2), 62, %s1575_s13  ;;  %vm2497_vm0 = vmmov (!%p139_p2), 0   ;;  %v2202_v3 = vld [vmem:[%s3031_s1 + $0x10] sm:$0xff] (!%p139_p2)  }
   0x6   : > { %142 = sbr.rel (%p139_p2) target bundleno = 409 (0x199), region = 32  ;;  %2034 = vmatprep.subr.bf16.mxu0 (!%p139_p2), %v2496_v1  ;;  %2174 = vmatprep.subr.bf16.mxu1 (!%p139_p2), %v2496_v1  ;;  %v2203_v4 = vld [vmem:[%s3031_s1 + $0x18] sm:$0xff] (!%p139_p2)   ;;  %v2204_v5 = vld [vmem:[%s3031_s1 + $0x20] sm:$0xff] (!%p139_p2)   ;;  %v2205_v6 = vld [vmem:[%s3031_s1 + $0x28] sm:$0xff] (!%p139_p2)  }
   0x7   : > { %2035 = vmatpush3.bf16.msra.mxu0 (!%p139_p2), %v2200_v0  ;;  %2182 = vmatpush3.bf16.msra.mxu1 (!%p139_p2), %v2200_v0  ;;  %p163_p3 = scmp.lt.s32.totalorder (!%p139_p2), %s162_s18, 1301  ;;  %v2206_v7 = vld [vmem:[%s3031_s1 + $0x30] sm:$0xff] (!%p139_p2)   ;;  %v2207_v8 = vld [vmem:[%s3031_s1 + $0x38] sm:$0xff] (!%p139_p2)   ;;  %v2672_v40 = vld [vmem:[%s3032_s2] ss:$0 sm:$0xff] (!%p139_p2) }
   0x8   : > { %2036 = vmatprep.subr.bf16.mxu0 (!%p139_p2), %v2496_v1  ;;  %2175 = vmatprep.subr.bf16.mxu1 (!%p139_p2), %v2496_v1 }
   0x9   : > { %2050 = vmatprep.mubr.msk.bf16.mxu0 (!%p139_p2), %vm2497_vm0, %v2496_v1  ;;  %2114 = vmatprep.mubr.msk.bf16.mxu1 (!%p139_p2), %vm2497_vm0, %v2496_v1 }
   0xb   : > { %2037 = vmatpush3.bf16.msra.mxu0 (!%p139_p2), %v2201_v2  ;;  %2183 = vmatpush3.bf16.msra.mxu1 (!%p139_p2), %v2201_v2 }
   0xc   : > { %2038 = vmatprep.subr.bf16.mxu0 (!%p139_p2), %v2496_v1  ;;  %2176 = vmatprep.subr.bf16.mxu1 (!%p139_p2), %v2496_v1 }
   0xd   : > { %s3035_s18 = smov (!%p163_p3, %s162_s18), 1301 }
   0xe   : > { %s1580_s21 = sshll.u32 %s3035_s18, 2 }
   0xf   : > { %s2553_s24 = scalar_lea.vmem %s3030_s0, %s1580_s21  ;;  %2039 = vmatpush3.bf16.msra.mxu0 %v2202_v3  ;;  %2184 = vmatpush3.bf16.msra.mxu1 %v2202_v3  ;;  %s2746_s13 = scalar_lea.vmem %s3033_s3, %s1580_s21 }
  0x10   : > { %2040 = vmatprep.subr.bf16.mxu0 %v2496_v1  ;;  %2177 = vmatprep.subr.bf16.mxu1 %v2496_v1  ;;  %v2208_v9 = vld [vmem:[%s2553_s24] sm:$0xff]   ;;  %v2210_v11 = vld [vmem:[%s2553_s24 + $0x8] sm:$0xff]   ;;  %v2212_v13 = vld [vmem:[%s2553_s24 + $0x10] sm:$0xff]  }
  0x11   : > { %v2209_v10 = vld [vmem:[%s2553_s24 + $0x80] sm:$0xff]   ;;  %v2211_v12 = vld [vmem:[%s2553_s24 + $0x88] sm:$0xff]   ;;  %v2213_v14 = vld [vmem:[%s2553_s24 + $0x90] sm:$0xff]  }
  0x12   : > { %v2214_v15 = vld [vmem:[%s2553_s24 + $0x18] sm:$0xff]   ;;  %v2216_v17 = vld [vmem:[%s2553_s24 + $0x20] sm:$0xff]   ;;  %v2218_v19 = vld [vmem:[%s2553_s24 + $0x28] sm:$0xff]  }
  0x13   : > { %2041 = vmatpush3.bf16.msra.mxu0 %v2203_v4  ;;  %2185 = vmatpush3.bf16.msra.mxu1 %v2203_v4  ;;  %v2215_v16 = vld [vmem:[%s2553_s24 + $0x98] sm:$0xff]   ;;  %v2217_v18 = vld [vmem:[%s2553_s24 + $0xa0] sm:$0xff]   ;;  %v2219_v20 = vld [vmem:[%s2553_s24 + $0xa8] sm:$0xff]  }
  0x14   : > { %2042 = vmatprep.subr.bf16.mxu0 %v2496_v1  ;;  %2178 = vmatprep.subr.bf16.mxu1 %v2496_v1  ;;  %v2220_v21 = vld [vmem:[%s2553_s24 + $0x30] sm:$0xff]   ;;  %v2222_v23 = vld [vmem:[%s2553_s24 + $0x38] sm:$0xff]   ;;  %v2224_v25 = vld [vmem:[%s2553_s24 + $0x40] sm:$0xff]  }
  0x15   : > { %v2221_v22 = vld [vmem:[%s2553_s24 + $0xb0] sm:$0xff]   ;;  %v2223_v24 = vld [vmem:[%s2553_s24 + $0xb8] sm:$0xff]   ;;  %v2225_v26 = vld [vmem:[%s2553_s24 + $0xc0] sm:$0xff]  }
  0x16   : > { %v2226_v27 = vld [vmem:[%s2553_s24 + $0x48] sm:$0xff]   ;;  %v2228_v29 = vld [vmem:[%s2553_s24 + $0x50] sm:$0xff]   ;;  %v2230_v31 = vld [vmem:[%s2553_s24 + $0x58] sm:$0xff]  }
  0x17   : > { %2043 = vmatpush3.bf16.msra.mxu0 %v2204_v5  ;;  %2186 = vmatpush3.bf16.msra.mxu1 %v2204_v5  ;;  %v2227_v28 = vld [vmem:[%s2553_s24 + $0xc8] sm:$0xff]   ;;  %v2229_v30 = vld [vmem:[%s2553_s24 + $0xd0] sm:$0xff]   ;;  %v2231_v32 = vld [vmem:[%s2553_s24 + $0xd8] sm:$0xff]  }
  0x18   : > { %2044 = vmatprep.subr.bf16.mxu0 %v2496_v1  ;;  %2179 = vmatprep.subr.bf16.mxu1 %v2496_v1  ;;  %v2232_v33 = vld [vmem:[%s2553_s24 + $0x60] sm:$0xff]   ;;  %v2234_v35 = vld [vmem:[%s2553_s24 + $0x68] sm:$0xff]   ;;  %v2236_v37 = vld [vmem:[%s2553_s24 + $0x70] sm:$0xff]  }
  0x19   : > { %v2233_v34 = vld [vmem:[%s2553_s24 + $0xe0] sm:$0xff]   ;;  %v2235_v36 = vld [vmem:[%s2553_s24 + $0xe8] sm:$0xff]   ;;  %v2237_v38 = vld [vmem:[%s2553_s24 + $0xf0] sm:$0xff]  }
  0x1a   : > { %v2238_v39 = vld [vmem:[%s2553_s24 + $0x78] sm:$0xff]  }
  0x1b   : > { %2045 = vmatpush3.bf16.msra.mxu0 %v2205_v6  ;;  %2187 = vmatpush3.bf16.msra.mxu1 %v2205_v6 }
  0x1c   : > { %2046 = vmatprep.subr.bf16.mxu0 %v2496_v1  ;;  %2180 = vmatprep.subr.bf16.mxu1 %v2496_v1 }
  0x1f   : > { %2047 = vmatpush3.bf16.msra.mxu0 %v2206_v7  ;;  %2188 = vmatpush3.bf16.msra.mxu1 %v2206_v7 }
  0x20   : > { %2048 = vmatprep.subr.bf16.mxu0 %v2496_v1  ;;  %2181 = vmatprep.subr.bf16.mxu1 %v2496_v1 }
  0x23   : > { %2049 = vmatpush3.bf16.msra.mxu0 %v2207_v8  ;;  %2189 = vmatpush3.bf16.msra.mxu1 %v2207_v8 }
  0x26   : > { %2051 = vmatmul.mubr.bf16.vlgmr.msra.gmra.mrb[0].mxu0 %v2208_v9  ;;  %2115 = vmatmul.mubr.bf16.vlgmr.msra.gmra.mrb[0].mxu1 %v2209_v10 }
  0x27   : > { %2054 = vmatprep.mubr.msk.bf16.mxu0 %vm2497_vm0, %v2496_v1  ;;  %2118 = vmatprep.mubr.msk.bf16.mxu1 %vm2497_vm0, %v2496_v1 }
  0x2e   : > { %2055 = vmatmul.mubr.bf16.gmra.mrb[4].mxu0 %v2210_v11  ;;  %2119 = vmatmul.mubr.bf16.gmra.mrb[4].mxu1 %v2211_v12 }
  0x2f   : > { %2058 = vmatprep.mubr.msk.bf16.mxu0 %vm2497_vm0, %v2496_v1  ;;  %2122 = vmatprep.mubr.msk.bf16.mxu1 %vm2497_vm0, %v2496_v1 }
  0x36   : > { %2059 = vmatmul.mubr.bf16.gmra.mrb[8].mxu0 %v2212_v13  ;;  %2123 = vmatmul.mubr.bf16.gmra.mrb[8].mxu1 %v2213_v14 }
  0x37   : > { %2062 = vmatprep.mubr.msk.bf16.mxu0 %vm2497_vm0, %v2496_v1  ;;  %2126 = vmatprep.mubr.msk.bf16.mxu1 %vm2497_vm0, %v2496_v1 }
  0x3e   : > { %2063 = vmatmul.mubr.bf16.gmra.mrb[12].mxu0 %v2214_v15  ;;  %2127 = vmatmul.mubr.bf16.gmra.mrb[12].mxu1 %v2215_v16 }
  0x3f   : > { %2066 = vmatprep.mubr.msk.bf16.mxu0 %vm2497_vm0, %v2496_v1  ;;  %2130 = vmatprep.mubr.msk.bf16.mxu1 %vm2497_vm0, %v2496_v1 }
  0x46   : > { %2067 = vmatmul.mubr.bf16.gmra.mrb[16].mxu0 %v2216_v17  ;;  %2131 = vmatmul.mubr.bf16.gmra.mrb[16].mxu1 %v2217_v18 }
  0x47   : > { %2070 = vmatprep.mubr.msk.bf16.mxu0 %vm2497_vm0, %v2496_v1  ;;  %2134 = vmatprep.mubr.msk.bf16.mxu1 %vm2497_vm0, %v2496_v1 }
  0x4e   : > { %2071 = vmatmul.mubr.bf16.gmra.mrb[20].mxu0 %v2218_v19  ;;  %2135 = vmatmul.mubr.bf16.gmra.mrb[20].mxu1 %v2219_v20 }
  0x4f   : > { %2074 = vmatprep.mubr.msk.bf16.mxu0 %vm2497_vm0, %v2496_v1  ;;  %2138 = vmatprep.mubr.msk.bf16.mxu1 %vm2497_vm0, %v2496_v1 }
  0x56   : > { %2075 = vmatmul.mubr.bf16.gmra.mrb[24].mxu0 %v2220_v21  ;;  %2139 = vmatmul.mubr.bf16.gmra.mrb[24].mxu1 %v2221_v22 }
  0x57   : > { %2078 = vmatprep.mubr.msk.bf16.mxu0 %vm2497_vm0, %v2496_v1  ;;  %2142 = vmatprep.mubr.msk.bf16.mxu1 %vm2497_vm0, %v2496_v1 }
  0x5e   : > { %2079 = vmatmul.mubr.bf16.gmra.mrb[28].mxu0 %v2222_v23  ;;  %2143 = vmatmul.mubr.bf16.gmra.mrb[28].mxu1 %v2223_v24 }
  0x5f   : > { %2082 = vmatprep.mubr.msk.bf16.mxu0 %vm2497_vm0, %v2496_v1  ;;  %2146 = vmatprep.mubr.msk.bf16.mxu1 %vm2497_vm0, %v2496_v1 }
  0x66   : > { %2083 = vmatmul.mubr.bf16.gmra.mrb[32].mxu0 %v2224_v25  ;;  %2147 = vmatmul.mubr.bf16.gmra.mrb[32].mxu1 %v2225_v26 }
  0x67   : > { %2086 = vmatprep.mubr.msk.bf16.mxu0 %vm2497_vm0, %v2496_v1  ;;  %2150 = vmatprep.mubr.msk.bf16.mxu1 %vm2497_vm0, %v2496_v1 }
  0x6e   : > { %2087 = vmatmul.mubr.bf16.gmra.mrb[36].mxu0 %v2226_v27  ;;  %2151 = vmatmul.mubr.bf16.gmra.mrb[36].mxu1 %v2227_v28 }
  0x6f   : > { %2090 = vmatprep.mubr.msk.bf16.mxu0 %vm2497_vm0, %v2496_v1  ;;  %2154 = vmatprep.mubr.msk.bf16.mxu1 %vm2497_vm0, %v2496_v1 }
  0x76   : > { %2091 = vmatmul.mubr.bf16.gmra.mrb[40].mxu0 %v2228_v29  ;;  %2155 = vmatmul.mubr.bf16.gmra.mrb[40].mxu1 %v2229_v30 }
  0x77   : > { %2094 = vmatprep.mubr.msk.bf16.mxu0 %vm2497_vm0, %v2496_v1  ;;  %2158 = vmatprep.mubr.msk.bf16.mxu1 %vm2497_vm0, %v2496_v1 }
  0x7e   : > { %2095 = vmatmul.mubr.bf16.gmra.mrb[44].mxu0 %v2230_v31  ;;  %2159 = vmatmul.mubr.bf16.gmra.mrb[44].mxu1 %v2231_v32 }
  0x7f   : > { %2098 = vmatprep.mubr.msk.bf16.mxu0 %vm2497_vm0, %v2496_v1  ;;  %2162 = vmatprep.mubr.msk.bf16.mxu1 %vm2497_vm0, %v2496_v1 }
  0x86   : > { %2099 = vmatmul.mubr.bf16.gmra.mrb[48].mxu0 %v2232_v33  ;;  %2163 = vmatmul.mubr.bf16.gmra.mrb[48].mxu1 %v2233_v34 }
  0x87   : > { %2102 = vmatprep.mubr.msk.bf16.mxu0 %vm2497_vm0, %v2496_v1  ;;  %2166 = vmatprep.mubr.msk.bf16.mxu1 %vm2497_vm0, %v2496_v1 }
  0x8e   : > { %2103 = vmatmul.mubr.bf16.gmra.mrb[52].mxu0 %v2234_v35  ;;  %2167 = vmatmul.mubr.bf16.gmra.mrb[52].mxu1 %v2235_v36 }
  0x8f   : > { %2106 = vmatprep.mubr.msk.bf16.mxu0 %vm2497_vm0, %v2496_v1  ;;  %2170 = vmatprep.mubr.msk.bf16.mxu1 %vm2497_vm0, %v2496_v1 }
  0x96   : > { %2107 = vmatmul.mubr.bf16.gmra.mrb[56].mxu0 %v2236_v37  ;;  %2171 = vmatmul.mubr.bf16.gmra.mrb[56].mxu1 %v2237_v38 }
  0x97   : > { %2110 = vmatprep.mubr.msk.bf16.mxu0 %vm2497_vm0, %v2496_v1 }
  0x9e   : > { %2111 = vmatmul.mubr.bf16.gmra.mrb[60].mxu0 %v2238_v39 }
  0xf9   : > { %v528_v41 = vpop.f32.mrb[0].mxu0  ;;  %v656_v42 = vpop.f32.mrb[0].mxu1 }
  0xfa   : > { %v2675_v43 = vadd.f32 %v2672_v40, %v528_v41  ;;  %v2678_v44 = vadd.f32 %v2672_v40, %v656_v42  ;;  %v2052_v45 = vpop.f32.mrb[1].mxu0  ;;  %v2116_v46 = vpop.f32.mrb[1].mxu1 }
  0xfb   : > { %v531_v47 = vpop.f32.mrb[2].mxu0  ;;  %v659_v48 = vpop.f32.mrb[2].mxu1 }
  0xfc   : > { %v1622_v49 = vmul.f32 -1.442695, %v2675_v43  ;;  %v1654_v50 = vmul.f32 -1.442695, %v2678_v44  ;;  %v2683_v51 = vadd.f32 %v2672_v40, %v531_v47  ;;  %v2686_v52 = vadd.f32 %v2672_v40, %v659_v48  ;;  %v2053_v53 = vpop.f32.mrb[3].mxu0  ;;  %v2117_v54 = vpop.f32.mrb[3].mxu1 }
  0xfe   : > { %2239 = vpow2.f32 %v1622_v49  ;;  %v1623_v55 = vmul.f32 -1.442695, %v2683_v51  ;;  %v1655_v56 = vmul.f32 -1.442695, %v2686_v52 }
  0xff   : > { %2241 = vpow2.f32 %v1654_v50 }
 0x100   : > { %2243 = vpow2.f32 %v1623_v55 }
 0x101   : > { %2245 = vpow2.f32 %v1655_v56  ;;  %v536_v57 = vpop.f32.mrb[4].mxu0  ;;  %v664_v58 = vpop.f32.mrb[4].mxu1 }
 0x102   : > { %v2691_v59 = vadd.f32 %v2672_v40, %v536_v57  ;;  %v2694_v60 = vadd.f32 %v2672_v40, %v664_v58  ;;  %v2056_v61 = vpop.f32.mrb[5].mxu0  ;;  %v2120_v62 = vpop.f32.mrb[5].mxu1 }
 0x103   : > { %v539_v63 = vpop.f32.mrb[6].mxu0  ;;  %v667_v0 = vpop.f32.mrb[6].mxu1 }
 0x104   : > { %v1624_v1 = vmul.f32 -1.442695, %v2691_v59  ;;  %v1656_v2 = vmul.f32 -1.442695, %v2694_v60  ;;  %v2699_v3 = vadd.f32 %v2672_v40, %v539_v63  ;;  %v2702_v4 = vadd.f32 %v2672_v40, %v667_v0  ;;  %v2057_v5 = vpop.f32.mrb[7].mxu0  ;;  %v2121_v6 = vpop.f32.mrb[7].mxu1 }
 0x106   : > { %2247 = vpow2.f32 %v1624_v1  ;;  %v1625_v7 = vmul.f32 -1.442695, %v2699_v3  ;;  %v1657_v8 = vmul.f32 -1.442695, %v2702_v4 }
 0x107   : > { %2249 = vpow2.f32 %v1656_v2 }
 0x108   : > { %v2240_v9 = vpop.eup %2239  ;;  %2251 = vpow2.f32 %v1625_v7 }
 0x109   : > { %v2242_v10 = vpop.eup %2241  ;;  %v961_v11 = vadd.f32 1.0, %v2240_v9  ;;  %2253 = vpow2.f32 %v1657_v8  ;;  %v544_v12 = vpop.f32.mrb[8].mxu0 }
 0x10a   : > { %v672_v13 = vpop.f32.mrb[8].mxu1  ;;  %v2244_v14 = vpop.eup %2243  ;;  %v993_v15 = vadd.f32 1.0, %v2242_v10  ;;  %v2707_v16 = vadd.f32 %v2672_v40, %v544_v12 }
 0x10b   : > { %v2710_v17 = vadd.f32 %v2672_v40, %v672_v13  ;;  %v2060_v18 = vpop.f32.mrb[9].mxu0  ;;  %v2124_v19 = vpop.f32.mrb[9].mxu1  ;;  %2255 = vrcp.f32 %v961_v11  ;;  %v962_v21 = vadd.f32 1.0, %v2244_v14 }
 0x10c   : > { %v2246_v20 = vpop.eup %2245  ;;  %v547_v22 = vpop.f32.mrb[10].mxu0  ;;  %2257 = vrcp.f32 %v993_v15  ;;  %v1626_v25 = vmul.f32 -1.442695, %v2707_v16 }
 0x10d   : > { %v675_v23 = vpop.f32.mrb[10].mxu1  ;;  %v994_v24 = vadd.f32 1.0, %v2246_v20  ;;  %v1658_v26 = vmul.f32 -1.442695, %v2710_v17  ;;  %v2061_v27 = vpop.f32.mrb[11].mxu0  ;;  %2259 = vrcp.f32 %v962_v21  ;;  %v2715_v28 = vadd.f32 %v2672_v40, %v547_v22 }
 0x10e   : > { %v2718_v29 = vadd.f32 %v2672_v40, %v675_v23  ;;  %v2125_v30 = vpop.f32.mrb[11].mxu1 }
 0x10f   : > { %2261 = vrcp.f32 %v994_v24  ;;  %v1627_v31 = vmul.f32 -1.442695, %v2715_v28 }
 0x110   : > { %2263 = vpow2.f32 %v1626_v25  ;;  %v1659_v32 = vmul.f32 -1.442695, %v2718_v29  ;;  %v2248_v33 = vpop.eup %2247 }
 0x111   : > { %2265 = vpow2.f32 %v1658_v26  ;;  %v2250_v34 = vpop.eup %2249  ;;  %v963_v35 = vadd.f32 1.0, %v2248_v33  ;;  %v552_v36 = vpop.f32.mrb[12].mxu0 }
 0x112   : > { %2267 = vpow2.f32 %v1627_v31  ;;  %v680_v37 = vpop.f32.mrb[12].mxu1  ;;  %v2252_v38 = vpop.eup %2251  ;;  %v995_v39 = vadd.f32 1.0, %v2250_v34  ;;  %v2723_v41 = vadd.f32 %v2672_v40, %v552_v36 }
 0x113   : > { %2269 = vpow2.f32 %v1659_v32  ;;  %v2726_v42 = vadd.f32 %v2672_v40, %v680_v37  ;;  %v2064_v45 = vpop.f32.mrb[13].mxu0  ;;  %v2128_v46 = vpop.f32.mrb[13].mxu1  ;;  %v964_v48 = vadd.f32 1.0, %v2252_v38 }
 0x114   : > { %v2254_v47 = vpop.eup %2253  ;;  %2271 = vrcp.f32 %v963_v35  ;;  %v555_v49 = vpop.f32.mrb[14].mxu0  ;;  %v1628_v54 = vmul.f32 -1.442695, %v2723_v41 }
 0x115   : > { %v683_v50 = vpop.f32.mrb[14].mxu1  ;;  %2273 = vrcp.f32 %v995_v39  ;;  %v996_v53 = vadd.f32 1.0, %v2254_v47  ;;  %v1660_v55 = vmul.f32 -1.442695, %v2726_v42  ;;  %v2065_v56 = vpop.f32.mrb[15].mxu0  ;;  %v2731_v58 = vadd.f32 %v2672_v40, %v555_v49 }
 0x116   : > { %v2256_v57 = vpop.eup %2255  ;;  %2275 = vrcp.f32 %v964_v48  ;;  %v2734_v61 = vadd.f32 %v2672_v40, %v683_v50  ;;  %v2129_v62 = vpop.f32.mrb[15].mxu1 }
 0x117   : > { %v2258_v63 = vpop.eup %2257  ;;  %2277 = vrcp.f32 %v996_v53  ;;  %v1629_v1 = vmul.f32 -1.442695, %v2731_v58  ;;  %v1147_v6 = vmul.f32 %v2256_v57, %v2675_v43 }
 0x118   : > { %v2260_v0 = vpop.eup %2259  ;;  %2279 = vpow2.f32 %v1628_v54  ;;  %v1661_v2 = vmul.f32 -1.442695, %v2734_v61  ;;  %v1179_v9 = vmul.f32 %v2258_v63, %v2678_v44 }
 0x119   : > { %v2262_v5 = vpop.eup %2261  ;;  %v1148_v7 = vmul.f32 %v2260_v0, %v2683_v51  ;;  %2281 = vpow2.f32 %v1660_v55  ;;  %v560_v11 = vpop.f32.mrb[16].mxu0 }
 0x11a   : > { %v2264_v8 = vpop.eup %2263  ;;  %v1180_v10 = vmul.f32 %v2262_v5, %v2686_v52  ;;  %2283 = vpow2.f32 %v1629_v1  ;;  %v688_v12 = vpop.f32.mrb[16].mxu1  ;;  %v2750_v51 = vadd.f32 %v2672_v40, %v560_v11 }
 0x11b   : > { %v2266_v13 = vpop.eup %2265  ;;  %v1813_v43 = vpack.c.bf16 %v1148_v7, %v1147_v6  ;;  %v965_v14 = vadd.f32 1.0, %v2264_v8  ;;  %2285 = vpow2.f32 %v1661_v2  ;;  %v2068_v44 = vpop.f32.mrb[17].mxu0  ;;  %v2753_v21 = vadd.f32 %v2672_v40, %v688_v12 }
 0x11c   : > { %v2132_v15 = vpop.f32.mrb[17].mxu1  ;;  %v2268_v18 = vpop.eup %2267  ;;  %v1893_v19 = vpack.c.bf16 %v1180_v10, %v1179_v9  ;;  %v997_v20 = vadd.f32 1.0, %v2266_v13  ;;  %v1630_v25 = vmul.f32 -1.442695, %v2750_v51 }
 0x11d   : > { %v563_v52 = vpop.f32.mrb[18].mxu0  ;;  %v691_v22 = vpop.f32.mrb[18].mxu1  ;;  %1814 = vst [vmem:[%s2746_s13] sm:$0xff] %v1813_v43   ;;  %2287 = vrcp.f32 %v965_v14  ;;  %v966_v24 = vadd.f32 1.0, %v2268_v18  ;;  %v1662_v33 = vmul.f32 -1.442695, %v2753_v21 }
 0x11e   : > { %v2270_v23 = vpop.eup %2269  ;;  %v2758_v26 = vadd.f32 %v2672_v40, %v563_v52  ;;  %v2069_v27 = vpop.f32.mrb[19].mxu0  ;;  %1980 = vst [vmem:[%s2746_s13 + $0x80] sm:$0xff] %v1893_v19   ;;  %2289 = vrcp.f32 %v997_v20  ;;  %v2763_v34 = vadd.f32 %v2672_v40, %v691_v22 }
 0x11f   : > { %v2133_v30 = vpop.f32.mrb[19].mxu1  ;;  %v2272_v31 = vpop.eup %2271  ;;  %v998_v32 = vadd.f32 1.0, %v2270_v23  ;;  %2291 = vrcp.f32 %v966_v24 }
 0x120   : > { %v2274_v35 = vpop.eup %2273  ;;  %v1631_v36 = vmul.f32 -1.442695, %v2758_v26  ;;  %v1663_v38 = vmul.f32 -1.442695, %v2763_v34  ;;  %v1149_v45 = vmul.f32 %v2272_v31, %v2691_v59 }
 0x121   : > { %v2276_v37 = vpop.eup %2275  ;;  %2293 = vrcp.f32 %v998_v32  ;;  %v1181_v48 = vmul.f32 %v2274_v35, %v2694_v60  ;;  %v568_v50 = vpop.f32.mrb[20].mxu0 }
 0x122   : > { %v2278_v39 = vpop.eup %2277  ;;  %v1150_v46 = vmul.f32 %v2276_v37, %v2699_v3  ;;  %2295 = vpow2.f32 %v1630_v25  ;;  %v696_v53 = vpop.f32.mrb[20].mxu1  ;;  %v2772_v57 = vadd.f32 %v2672_v40, %v568_v50 }
 0x123   : > { %v2280_v47 = vpop.eup %2279  ;;  %v1182_v49 = vmul.f32 %v2278_v39, %v2702_v4  ;;  %2297 = vpow2.f32 %v1662_v33  ;;  %v2072_v59 = vpop.f32.mrb[21].mxu0  ;;  %v2775_v60 = vadd.f32 %v2672_v40, %v696_v53 }
 0x124   : > { %v2282_v54 = vpop.eup %2281  ;;  %v1818_v55 = vpack.c.bf16 %v1150_v46, %v1149_v45  ;;  %v967_v56 = vadd.f32 1.0, %v2280_v47  ;;  %2299 = vpow2.f32 %v1631_v36  ;;  %v2136_v62 = vpop.f32.mrb[21].mxu1  ;;  %v1632_v6 = vmul.f32 -1.442695, %v2772_v57 }
 0x125   : > { %v2284_v3 = vpop.eup %2283  ;;  %v1898_v63 = vpack.c.bf16 %v1182_v49, %v1181_v48  ;;  %v999_v0 = vadd.f32 1.0, %v2282_v54  ;;  %2301 = vpow2.f32 %v1663_v38  ;;  %v571_v4 = vpop.f32.mrb[22].mxu0  ;;  %v1664_v11 = vmul.f32 -1.442695, %v2775_v60 }
 0x126   : > { %v699_v1 = vpop.f32.mrb[22].mxu1  ;;  %v2286_v2 = vpop.eup %2285  ;;  %1965 = vst [vmem:[%s2746_s13 + $0x8] sm:$0xff] %v1818_v55   ;;  %2303 = vrcp.f32 %v967_v56  ;;  %v968_v5 = vadd.f32 1.0, %v2284_v3  ;;  %v2780_v7 = vadd.f32 %v2672_v40, %v571_v4 }
 0x127   : > { %v2073_v8 = vpop.f32.mrb[23].mxu0  ;;  %v2137_v9 = vpop.f32.mrb[23].mxu1  ;;  %1981 = vst [vmem:[%s2746_s13 + $0x88] sm:$0xff] %v1898_v63   ;;  %2305 = vrcp.f32 %v999_v0  ;;  %v1000_v10 = vadd.f32 1.0, %v2286_v2  ;;  %v2785_v12 = vadd.f32 %v2672_v40, %v699_v1 }
 0x128   : > { %v2288_v13 = vpop.eup %2287  ;;  %2307 = vrcp.f32 %v968_v5  ;;  %v1633_v43 = vmul.f32 -1.442695, %v2780_v7 }
 0x129   : > { %v2290_v14 = vpop.eup %2289  ;;  %2309 = vrcp.f32 %v1000_v10  ;;  %v1665_v44 = vmul.f32 -1.442695, %v2785_v12  ;;  %v1151_v19 = vmul.f32 %v2288_v13, %v2707_v16  ;;  %v576_v22 = vpop.f32.mrb[24].mxu0 }
 0x12a   : > { %v2292_v15 = vpop.eup %2291  ;;  %2311 = vpow2.f32 %v1632_v6  ;;  %v1183_v20 = vmul.f32 %v2290_v14, %v2710_v17  ;;  %v704_v23 = vpop.f32.mrb[24].mxu1  ;;  %v2794_v27 = vadd.f32 %v2672_v40, %v576_v22 }
 0x12b   : > { %v2294_v18 = vpop.eup %2293  ;;  %v1152_v52 = vmul.f32 %v2292_v15, %v2715_v28  ;;  %2313 = vpow2.f32 %v1664_v11  ;;  %v2797_v30 = vadd.f32 %v2672_v40, %v704_v23  ;;  %v2076_v31 = vpop.f32.mrb[25].mxu0 }
 0x12c   : > { %v2296_v24 = vpop.eup %2295  ;;  %v1184_v25 = vmul.f32 %v2294_v18, %v2718_v29  ;;  %2315 = vpow2.f32 %v1633_v43  ;;  %v2140_v16 = vpop.f32.mrb[25].mxu1  ;;  %v1634_v38 = vmul.f32 -1.442695, %v2794_v27 }
 0x12d   : > { %v2298_v32 = vpop.eup %2297  ;;  %v1823_v17 = vpack.c.bf16 %v1152_v52, %v1151_v19  ;;  %v969_v33 = vadd.f32 1.0, %v2296_v24  ;;  %2317 = vpow2.f32 %v1665_v44  ;;  %v579_v28 = vpop.f32.mrb[26].mxu0  ;;  %v1666_v54 = vmul.f32 -1.442695, %v2797_v30 }
 0x12e   : > { %v707_v35 = vpop.f32.mrb[26].mxu1  ;;  %v2300_v36 = vpop.eup %2299  ;;  %v1903_v37 = vpack.c.bf16 %v1184_v25, %v1183_v20  ;;  %v1001_v29 = vadd.f32 1.0, %v2298_v32  ;;  %v2802_v47 = vadd.f32 %v2672_v40, %v579_v28 }
 0x12f   : > { %v2077_v39 = vpop.f32.mrb[27].mxu0  ;;  %v2302_v45 = vpop.eup %2301  ;;  %1966 = vst [vmem:[%s2746_s13 + $0x10] sm:$0xff] %v1823_v17   ;;  %2319 = vrcp.f32 %v969_v33  ;;  %v970_v46 = vadd.f32 1.0, %v2300_v36  ;;  %v2805_v48 = vadd.f32 %v2672_v40, %v707_v35 }
 0x130   : > { %v2141_v49 = vpop.f32.mrb[27].mxu1  ;;  %v2304_v50 = vpop.eup %2303  ;;  %1982 = vst [vmem:[%s2746_s13 + $0x90] sm:$0xff] %v1903_v37   ;;  %2321 = vrcp.f32 %v1001_v29  ;;  %v1002_v53 = vadd.f32 1.0, %v2302_v45  ;;  %v1635_v56 = vmul.f32 -1.442695, %v2802_v47 }
 0x131   : > { %v2306_v55 = vpop.eup %2305  ;;  %2323 = vrcp.f32 %v970_v46  ;;  %v1667_v62 = vmul.f32 -1.442695, %v2805_v48  ;;  %v1153_v63 = vmul.f32 %v2304_v50, %v2723_v41  ;;  %v584_v1 = vpop.f32.mrb[28].mxu0 }
 0x132   : > { %v2308_v59 = vpop.eup %2307  ;;  %2325 = vrcp.f32 %v1002_v53  ;;  %v1185_v0 = vmul.f32 %v2306_v55, %v2726_v42  ;;  %v712_v2 = vpop.f32.mrb[28].mxu1  ;;  %v2816_v8 = vadd.f32 %v2672_v40, %v584_v1 }
 0x133   : > { %v2310_v3 = vpop.eup %2309  ;;  %v1154_v4 = vmul.f32 %v2308_v59, %v2731_v58  ;;  %2327 = vpow2.f32 %v1634_v38  ;;  %v2819_v9 = vadd.f32 %v2672_v40, %v712_v2  ;;  %v2080_v10 = vpop.f32.mrb[29].mxu0 }
 0x134   : > { %v2312_v5 = vpop.eup %2311  ;;  %v1186_v6 = vmul.f32 %v2310_v3, %v2734_v61  ;;  %2329 = vpow2.f32 %v1666_v54  ;;  %v2144_v41 = vpop.f32.mrb[29].mxu1  ;;  %v1636_v52 = vmul.f32 -1.442695, %v2816_v8 }
 0x135   : > { %v2314_v11 = vpop.eup %2313  ;;  %v1828_v42 = vpack.c.bf16 %v1154_v4, %v1153_v63  ;;  %v971_v13 = vadd.f32 1.0, %v2312_v5  ;;  %2331 = vpow2.f32 %v1635_v56  ;;  %v587_v58 = vpop.f32.mrb[30].mxu0  ;;  %v1668_v24 = vmul.f32 -1.442695, %v2819_v9 }
 0x136   : > { %v715_v43 = vpop.f32.mrb[30].mxu1  ;;  %v2316_v14 = vpop.eup %2315  ;;  %v1908_v44 = vpack.c.bf16 %v1186_v6, %v1185_v0  ;;  %v1003_v61 = vadd.f32 1.0, %v2314_v11  ;;  %2333 = vpow2.f32 %v1667_v62  ;;  %v2824_v22 = vadd.f32 %v2672_v40, %v587_v58 }
 0x137   : > { %v2081_v15 = vpop.f32.mrb[31].mxu0  ;;  %v2145_v18 = vpop.f32.mrb[31].mxu1  ;;  %1967 = vst [vmem:[%s2746_s13 + $0x18] sm:$0xff] %v1828_v42   ;;  %2335 = vrcp.f32 %v971_v13  ;;  %v972_v20 = vadd.f32 1.0, %v2316_v14  ;;  %v2829_v25 = vadd.f32 %v2672_v40, %v715_v43 }
 0x138   : > { %v2318_v19 = vpop.eup %2317  ;;  %1983 = vst [vmem:[%s2746_s13 + $0x98] sm:$0xff] %v1908_v44   ;;  %2337 = vrcp.f32 %v1003_v61  ;;  %v1637_v16 = vmul.f32 -1.442695, %v2824_v22 }
 0x139   : > { %v1004_v23 = vadd.f32 1.0, %v2318_v19  ;;  %v2320_v31 = vpop.eup %2319  ;;  %2339 = vrcp.f32 %v972_v20  ;;  %v1669_v17 = vmul.f32 -1.442695, %v2829_v25  ;;  %v592_v28 = vpop.f32.mrb[32].mxu0 }
 0x13a   : > { %v2322_v32 = vpop.eup %2321  ;;  %v720_v35 = vpop.f32.mrb[32].mxu1  ;;  %v1155_v37 = vmul.f32 %v2320_v31, %v2750_v51  ;;  %v2836_v38 = vadd.f32 %v2672_v40, %v592_v28 }
 0x13b   : > { %2341 = vrcp.f32 %v1004_v23  ;;  %v2324_v33 = vpop.eup %2323  ;;  %v2084_v39 = vpop.f32.mrb[33].mxu0  ;;  %v1187_v49 = vmul.f32 %v2322_v32, %v2753_v21  ;;  %v2841_v53 = vadd.f32 %v2672_v40, %v720_v35 }
 0x13c   : > { %2343 = vpow2.f32 %v1636_v52  ;;  %v2326_v36 = vpop.eup %2325  ;;  %v1156_v29 = vmul.f32 %v2324_v33, %v2758_v26  ;;  %v2148_v45 = vpop.f32.mrb[33].mxu1  ;;  %v1638_v1 = vmul.f32 -1.442695, %v2836_v38 }
 0x13d   : > { %2345 = vpow2.f32 %v1668_v24  ;;  %v2328_v46 = vpop.eup %2327  ;;  %v1188_v50 = vmul.f32 %v2326_v36, %v2763_v34  ;;  %v595_v54 = vpop.f32.mrb[34].mxu0  ;;  %v1670_v10 = vmul.f32 -1.442695, %v2841_v53 }
 0x13e   : > { %2347 = vpow2.f32 %v1637_v16  ;;  %v723_v51 = vpop.f32.mrb[34].mxu1  ;;  %v2330_v55 = vpop.eup %2329  ;;  %v1833_v26 = vpack.c.bf16 %v1156_v29, %v1155_v37  ;;  %v973_v56 = vadd.f32 1.0, %v2328_v46  ;;  %v2844_v21 = vadd.f32 %v2672_v40, %v595_v54 }
 0x13f   : > { %2349 = vpow2.f32 %v1669_v17  ;;  %v2085_v59 = vpop.f32.mrb[35].mxu0  ;;  %v2149_v62 = vpop.f32.mrb[35].mxu1  ;;  %v1913_v63 = vpack.c.bf16 %v1188_v50, %v1187_v49  ;;  %v1005_v0 = vadd.f32 1.0, %v2330_v55  ;;  %v2849_v2 = vadd.f32 %v2672_v40, %v723_v51 }
 0x140   : > { %v2332_v3 = vpop.eup %2331  ;;  %1968 = vst [vmem:[%s2746_s13 + $0x20] sm:$0xff] %v1833_v26   ;;  %2351 = vrcp.f32 %v973_v56  ;;  %v1639_v11 = vmul.f32 -1.442695, %v2844_v21 }
 0x141   : > { %v2334_v34 = vpop.eup %2333  ;;  %v974_v4 = vadd.f32 1.0, %v2332_v3  ;;  %1984 = vst [vmem:[%s2746_s13 + $0xa0] sm:$0xff] %v1913_v63   ;;  %2353 = vrcp.f32 %v1005_v0  ;;  %v1671_v13 = vmul.f32 -1.442695, %v2849_v2  ;;  %v600_v58 = vpop.f32.mrb[36].mxu0 }
 0x142   : > { %v2336_v5 = vpop.eup %2335  ;;  %v1006_v6 = vadd.f32 1.0, %v2334_v34  ;;  %v728_v43 = vpop.f32.mrb[36].mxu1  ;;  %v2858_v15 = vadd.f32 %v2672_v40, %v600_v58 }
 0x143   : > { %v2338_v41 = vpop.eup %2337  ;;  %2355 = vrcp.f32 %v974_v4  ;;  %v1157_v44 = vmul.f32 %v2336_v5, %v2772_v57  ;;  %v2088_v18 = vpop.f32.mrb[37].mxu0  ;;  %v2863_v24 = vadd.f32 %v2672_v40, %v728_v43 }
 0x144   : > { %v2340_v42 = vpop.eup %2339  ;;  %2357 = vrcp.f32 %v1006_v6  ;;  %v2152_v19 = vpop.f32.mrb[37].mxu1  ;;  %v1189_v52 = vmul.f32 %v2338_v41, %v2775_v60  ;;  %v1640_v60 = vmul.f32 -1.442695, %v2858_v15 }
 0x145   : > { %v2342_v14 = vpop.eup %2341  ;;  %v1158_v61 = vmul.f32 %v2340_v42, %v2780_v7  ;;  %2359 = vpow2.f32 %v1638_v1  ;;  %v603_v31 = vpop.f32.mrb[38].mxu0  ;;  %v1672_v46 = vmul.f32 -1.442695, %v2863_v24 }
 0x146   : > { %v2344_v20 = vpop.eup %2343  ;;  %v1190_v23 = vmul.f32 %v2342_v14, %v2785_v12  ;;  %2361 = vpow2.f32 %v1670_v10  ;;  %v731_v57 = vpop.f32.mrb[38].mxu1  ;;  %v2868_v29 = vadd.f32 %v2672_v40, %v603_v31 }
 0x147   : > { %v2346_v16 = vpop.eup %2345  ;;  %v1838_v7 = vpack.c.bf16 %v1158_v61, %v1157_v44  ;;  %v975_v32 = vadd.f32 1.0, %v2344_v20  ;;  %2363 = vpow2.f32 %v1639_v11  ;;  %v2089_v17 = vpop.f32.mrb[39].mxu0  ;;  %v2871_v39 = vadd.f32 %v2672_v40, %v731_v57 }
 0x148   : > { %v2153_v33 = vpop.f32.mrb[39].mxu1  ;;  %v2348_v28 = vpop.eup %2347  ;;  %v1918_v35 = vpack.c.bf16 %v1190_v23, %v1189_v52  ;;  %v1007_v36 = vadd.f32 1.0, %v2346_v16  ;;  %2365 = vpow2.f32 %v1671_v13  ;;  %v1641_v50 = vmul.f32 -1.442695, %v2868_v29 }
 0x149   : > { %v2350_v12 = vpop.eup %2349  ;;  %1969 = vst [vmem:[%s2746_s13 + $0x28] sm:$0xff] %v1838_v7   ;;  %2367 = vrcp.f32 %v975_v32  ;;  %v976_v37 = vadd.f32 1.0, %v2348_v28  ;;  %v1673_v51 = vmul.f32 -1.442695, %v2871_v39  ;;  %v608_v55 = vpop.f32.mrb[40].mxu0 }
 0x14a   : > { %1985 = vst [vmem:[%s2746_s13 + $0xa8] sm:$0xff] %v1918_v35   ;;  %2369 = vrcp.f32 %v1007_v36  ;;  %v1008_v45 = vadd.f32 1.0, %v2350_v12  ;;  %v2352_v49 = vpop.eup %2351  ;;  %v736_v26 = vpop.f32.mrb[40].mxu1  ;;  %v2878_v59 = vadd.f32 %v2672_v40, %v608_v55 }
 0x14b   : > { %2371 = vrcp.f32 %v976_v37  ;;  %v2354_v54 = vpop.eup %2353  ;;  %v2092_v62 = vpop.f32.mrb[41].mxu0  ;;  %v1159_v0 = vmul.f32 %v2352_v49, %v2794_v27  ;;  %v2883_v4 = vadd.f32 %v2672_v40, %v736_v26 }
 0x14c   : > { %2373 = vrcp.f32 %v1008_v45  ;;  %v2156_v3 = vpop.f32.mrb[41].mxu1  ;;  %v611_v1 = vpop.f32.mrb[42].mxu0  ;;  %v1191_v10 = vmul.f32 %v2354_v54, %v2797_v30  ;;  %v1642_v11 = vmul.f32 -1.442695, %v2878_v59 }
 0x14d   : > { %v2356_v56 = vpop.eup %2355  ;;  %2375 = vpow2.f32 %v1640_v60  ;;  %v739_v5 = vpop.f32.mrb[42].mxu1  ;;  %v2889_v43 = vadd.f32 %v2672_v40, %v611_v1  ;;  %v1674_v19 = vmul.f32 -1.442695, %v2883_v4 }
 0x14e   : > { %v2358_v63 = vpop.eup %2357  ;;  %v1160_v34 = vmul.f32 %v2356_v56, %v2802_v47  ;;  %2377 = vpow2.f32 %v1672_v46  ;;  %v2093_v42 = vpop.f32.mrb[43].mxu0  ;;  %v2892_v30 = vadd.f32 %v2672_v40, %v739_v5 }
 0x14f   : > { %v2360_v6 = vpop.eup %2359  ;;  %v1192_v41 = vmul.f32 %v2358_v63, %v2805_v48  ;;  %2379 = vpow2.f32 %v1641_v50  ;;  %v2157_v13 = vpop.f32.mrb[43].mxu1  ;;  %v1643_v23 = vmul.f32 -1.442695, %v2889_v43 }
 0x150   : > { %v2362_v27 = vpop.eup %2361  ;;  %v1843_v47 = vpack.c.bf16 %v1160_v34, %v1159_v0  ;;  %v977_v58 = vadd.f32 1.0, %v2360_v6  ;;  %2381 = vpow2.f32 %v1673_v51  ;;  %v1675_v57 = vmul.f32 -1.442695, %v2892_v30 }
 0x151   : > { %v2364_v14 = vpop.eup %2363  ;;  %v1923_v44 = vpack.c.bf16 %v1192_v41, %v1191_v10  ;;  %v1009_v61 = vadd.f32 1.0, %v2362_v27  ;;  %2383 = vpow2.f32 %v1642_v11  ;;  %v616_v16 = vpop.f32.mrb[44].mxu0 }
 0x152   : > { %v2366_v48 = vpop.eup %2365  ;;  %1970 = vst [vmem:[%s2746_s13 + $0x30] sm:$0xff] %v1843_v47   ;;  %2385 = vrcp.f32 %v977_v58  ;;  %v978_v18 = vadd.f32 1.0, %v2364_v14  ;;  %v744_v7 = vpop.f32.mrb[44].mxu1  ;;  %v2900_v17 = vadd.f32 %v2672_v40, %v616_v16 }
 0x153   : > { %v2368_v20 = vpop.eup %2367  ;;  %1986 = vst [vmem:[%s2746_s13 + $0xb0] sm:$0xff] %v1923_v44   ;;  %2387 = vrcp.f32 %v1009_v61  ;;  %v1010_v52 = vadd.f32 1.0, %v2366_v48  ;;  %v2096_v33 = vpop.f32.mrb[45].mxu0  ;;  %v2908_v54 = vadd.f32 %v2672_v40, %v744_v7 }
 0x154   : > { %v2370_v31 = vpop.eup %2369  ;;  %2389 = vrcp.f32 %v978_v18  ;;  %v2160_v28 = vpop.f32.mrb[45].mxu1  ;;  %v1161_v36 = vmul.f32 %v2368_v20, %v2816_v8  ;;  %v1644_v50 = vmul.f32 -1.442695, %v2900_v17 }
 0x155   : > { %v2372_v32 = vpop.eup %2371  ;;  %2391 = vrcp.f32 %v1010_v52  ;;  %v1193_v60 = vmul.f32 %v2370_v31, %v2819_v9  ;;  %v619_v37 = vpop.f32.mrb[46].mxu0  ;;  %v1676_v5 = vmul.f32 -1.442695, %v2908_v54 }
 0x156   : > { %v2374_v35 = vpop.eup %2373  ;;  %v1162_v12 = vmul.f32 %v2372_v32, %v2824_v22  ;;  %2393 = vpow2.f32 %v1674_v19  ;;  %v747_v45 = vpop.f32.mrb[46].mxu1  ;;  %v2911_v22 = vadd.f32 %v2672_v40, %v619_v37 }
 0x157   : > { %v2376_v46 = vpop.eup %2375  ;;  %v1194_v49 = vmul.f32 %v2374_v35, %v2829_v25  ;;  %2395 = vpow2.f32 %v1643_v23  ;;  %v2097_v51 = vpop.f32.mrb[47].mxu0  ;;  %v2914_v3 = vadd.f32 %v2672_v40, %v747_v45 }
 0x158   : > { %v2161_v55 = vpop.f32.mrb[47].mxu1  ;;  %v2378_v8 = vpop.eup %2377  ;;  %v1848_v9 = vpack.c.bf16 %v1162_v12, %v1161_v36  ;;  %v979_v26 = vadd.f32 1.0, %v2376_v46  ;;  %2397 = vpow2.f32 %v1675_v57  ;;  %v1645_v41 = vmul.f32 -1.442695, %v2911_v22 }
 0x159   : > { %v2380_v56 = vpop.eup %2379  ;;  %v1928_v62 = vpack.c.bf16 %v1194_v49, %v1193_v60  ;;  %v1011_v25 = vadd.f32 1.0, %v2378_v8  ;;  %2399 = vpow2.f32 %v1644_v50  ;;  %v624_v11 = vpop.f32.mrb[48].mxu0  ;;  %v1677_v27 = vmul.f32 -1.442695, %v2914_v3 }
 0x15a   : > { %v2382_v63 = vpop.eup %2381  ;;  %1971 = vst [vmem:[%s2746_s13 + $0x38] sm:$0xff] %v1848_v9   ;;  %2401 = vrcp.f32 %v979_v26  ;;  %v980_v0 = vadd.f32 1.0, %v2380_v56  ;;  %v752_v42 = vpop.f32.mrb[48].mxu1  ;;  %v2922_v47 = vadd.f32 %v2672_v40, %v624_v11 }
 0x15b   : > { %v2384_v34 = vpop.eup %2383  ;;  %1987 = vst [vmem:[%s2746_s13 + $0xb8] sm:$0xff] %v1928_v62   ;;  %2403 = vrcp.f32 %v1011_v25  ;;  %v1012_v1 = vadd.f32 1.0, %v2382_v63  ;;  %v2100_v58 = vpop.f32.mrb[49].mxu0  ;;  %v2928_v23 = vadd.f32 %v2672_v40, %v752_v42 }
 0x15c   : > { %v2386_v6 = vpop.eup %2385  ;;  %2405 = vrcp.f32 %v980_v0  ;;  %v981_v10 = vadd.f32 1.0, %v2384_v34  ;;  %v2164_v14 = vpop.f32.mrb[49].mxu1  ;;  %v1646_v52 = vmul.f32 -1.442695, %v2922_v47 }
 0x15d   : > { %v2388_v13 = vpop.eup %2387  ;;  %2407 = vrcp.f32 %v1012_v1  ;;  %v1163_v61 = vmul.f32 %v2386_v6, %v2836_v38  ;;  %v627_v48 = vpop.f32.mrb[50].mxu0 }
 0x15e   : > { %v2390_v44 = vpop.eup %2389  ;;  %2409 = vrcp.f32 %v981_v10  ;;  %v755_v18 = vpop.f32.mrb[50].mxu1  ;;  %v1195_v7 = vmul.f32 %v2388_v13, %v2841_v53  ;;  %v2933_v32 = vadd.f32 %v2672_v40, %v627_v48 }
 0x15f   : > { %v2392_v19 = vpop.eup %2391  ;;  %v1164_v20 = vmul.f32 %v2390_v44, %v2844_v21  ;;  %2411 = vpow2.f32 %v1676_v5  ;;  %v2101_v31 = vpop.f32.mrb[51].mxu0  ;;  %v2936_v35 = vadd.f32 %v2672_v40, %v755_v18 }
 0x160   : > { %v2165_v57 = vpop.f32.mrb[51].mxu1  ;;  %v2394_v16 = vpop.eup %2393  ;;  %v1196_v38 = vmul.f32 %v2392_v19, %v2849_v2  ;;  %2413 = vpow2.f32 %v1645_v41  ;;  %v1678_v2 = vmul.f32 -1.442695, %v2928_v23  ;;  %v1647_v49 = vmul.f32 -1.442695, %v2933_v32 }
 0x161   : > { %v2396_v21 = vpop.eup %2395  ;;  %v1853_v33 = vpack.c.bf16 %v1164_v20, %v1163_v61  ;;  %v1013_v28 = vadd.f32 1.0, %v2394_v16  ;;  %2415 = vpow2.f32 %v1677_v27  ;;  %v632_v50 = vpop.f32.mrb[52].mxu0  ;;  %v1679_v8 = vmul.f32 -1.442695, %v2936_v35 }
 0x162   : > { %v2398_v36 = vpop.eup %2397  ;;  %v1933_v60 = vpack.c.bf16 %v1196_v38, %v1195_v7  ;;  %v982_v12 = vadd.f32 1.0, %v2396_v21  ;;  %2417 = vpow2.f32 %v1646_v52  ;;  %v760_v51 = vpop.f32.mrb[52].mxu1  ;;  %v2944_v9 = vadd.f32 %v2672_v40, %v632_v50 }
 0x163   : > { %v2400_v37 = vpop.eup %2399  ;;  %1972 = vst [vmem:[%s2746_s13 + $0x40] sm:$0xff] %v1853_v33   ;;  %2419 = vrcp.f32 %v1013_v28  ;;  %v1014_v53 = vadd.f32 1.0, %v2398_v36  ;;  %v2947_v26 = vadd.f32 %v2672_v40, %v760_v51  ;;  %v2104_v56 = vpop.f32.mrb[53].mxu0 }
 0x164   : > { %v2402_v45 = vpop.eup %2401  ;;  %1988 = vst [vmem:[%s2746_s13 + $0xc0] sm:$0xff] %v1933_v60   ;;  %2421 = vrcp.f32 %v982_v12  ;;  %v983_v46 = vadd.f32 1.0, %v2400_v37  ;;  %v2168_v62 = vpop.f32.mrb[53].mxu1  ;;  %v1648_v10 = vmul.f32 -1.442695, %v2944_v9 }
 0x165   : > { %v2404_v55 = vpop.eup %2403  ;;  %2423 = vrcp.f32 %v1014_v53  ;;  %v1165_v63 = vmul.f32 %v2402_v45, %v2858_v15  ;;  %v635_v34 = vpop.f32.mrb[54].mxu0  ;;  %v1680_v41 = vmul.f32 -1.442695, %v2947_v26  ;;  %v2958_v15 = vld [vmem:[%s3032_s2] ss:$0 sm:$0xff] }
 0x166   : > { %v2406_v25 = vpop.eup %2405  ;;  %v1197_v0 = vmul.f32 %v2404_v55, %v2863_v24  ;;  %2425 = vrcp.f32 %v983_v46  ;;  %v763_v1 = vpop.f32.mrb[54].mxu1  ;;  %v2961_v24 = vadd.f32 %v2958_v15, %v635_v34 }
 0x167   : > { %v2408_v5 = vpop.eup %2407  ;;  %v1166_v6 = vmul.f32 %v2406_v25, %v2868_v29  ;;  %2427 = vpow2.f32 %v1678_v2  ;;  %v2105_v40 = vpop.f32.mrb[55].mxu0  ;;  %v2964_v29 = vadd.f32 %v2958_v15, %v763_v1 }
 0x168   : > { %v2169_v11 = vpop.f32.mrb[55].mxu1  ;;  %v2410_v42 = vpop.eup %2409  ;;  %v1198_v13 = vmul.f32 %v2408_v5, %v2871_v39  ;;  %2429 = vpow2.f32 %v1647_v49  ;;  %v1649_v18 = vmul.f32 -1.442695, %v2961_v24 }
 0x169   : > { %v2412_v27 = vpop.eup %2411  ;;  %v1858_v58 = vpack.c.bf16 %v1166_v6, %v1165_v63  ;;  %2431 = vpow2.f32 %v1679_v8  ;;  %v1681_v52 = vmul.f32 -1.442695, %v2964_v29  ;;  %v640_v31 = vpop.f32.mrb[56].mxu0  ;;  %v1167_v60 = vmul.f32 %v2410_v42, %v2878_v59 }
 0x16a   : > { %v2414_v14 = vpop.eup %2413  ;;  %v1938_v44 = vpack.c.bf16 %v1198_v13, %v1197_v0  ;;  %v1015_v61 = vadd.f32 1.0, %v2412_v27  ;;  %2433 = vpow2.f32 %v1648_v10  ;;  %v768_v57 = vpop.f32.mrb[56].mxu1  ;;  %v2971_v38 = vadd.f32 %v2958_v15, %v640_v31 }
 0x16b   : > { %v2416_v39 = vpop.eup %2415  ;;  %1973 = vst [vmem:[%s2746_s13 + $0x48] sm:$0xff] %v1858_v58   ;;  %v984_v48 = vadd.f32 1.0, %v2414_v14  ;;  %2435 = vpow2.f32 %v1680_v41  ;;  %v2974_v21 = vadd.f32 %v2958_v15, %v768_v57  ;;  %v2108_v33 = vpop.f32.mrb[57].mxu0 }
 0x16c   : > { %v2418_v19 = vpop.eup %2417  ;;  %1989 = vst [vmem:[%s2746_s13 + $0xc8] sm:$0xff] %v1938_v44   ;;  %2437 = vrcp.f32 %v1015_v61  ;;  %v1016_v20 = vadd.f32 1.0, %v2416_v39  ;;  %v2172_v28 = vpop.f32.mrb[57].mxu1  ;;  %v1650_v45 = vmul.f32 -1.442695, %v2971_v38 }
 0x16d   : > { %v2420_v16 = vpop.eup %2419  ;;  %2439 = vrcp.f32 %v984_v48  ;;  %v985_v7 = vadd.f32 1.0, %v2418_v19  ;;  %v643_v12 = vpop.f32.mrb[58].mxu0  ;;  %v1682_v46 = vmul.f32 -1.442695, %v2974_v21 }
 0x16e   : > { %v2422_v36 = vpop.eup %2421  ;;  %2441 = vrcp.f32 %v1016_v20  ;;  %v771_v37 = vpop.f32.mrb[58].mxu1  ;;  %v1199_v55 = vmul.f32 %v2420_v16, %v2883_v4 }
 0x16f   : > { %v2424_v53 = vpop.eup %2423  ;;  %v1168_v2 = vmul.f32 %v2422_v36, %v2889_v43  ;;  %2443 = vrcp.f32 %v985_v7  ;;  %v2109_v49 = vpop.f32.mrb[59].mxu0  ;;  %v2983_v43 = vadd.f32 %v2958_v15, %v643_v12  ;;  %v2986_v0 = vadd.f32 %v2958_v15, %v771_v37 }
 0x170   : > { %v2173_v50 = vpop.f32.mrb[59].mxu1  ;;  %v2426_v51 = vpop.eup %2425  ;;  %v1200_v8 = vmul.f32 %v2424_v53, %v2892_v30  ;;  %2445 = vpow2.f32 %v1649_v18 }
 0x171   : > { %v2428_v59 = vpop.eup %2427  ;;  %v1863_v56 = vpack.c.bf16 %v1168_v2, %v1167_v60  ;;  %2447 = vpow2.f32 %v1681_v52  ;;  %v648_v5 = vpop.f32.mrb[60].mxu0  ;;  %v1651_v41 = vmul.f32 -1.442695, %v2983_v43  ;;  %v1683_v27 = vmul.f32 -1.442695, %v2986_v0 }
 0x172   : > { %v2430_v62 = vpop.eup %2429  ;;  %v1943_v25 = vpack.c.bf16 %v1200_v8, %v1199_v55  ;;  %v1017_v63 = vadd.f32 1.0, %v2428_v59  ;;  %2449 = vpow2.f32 %v1650_v45  ;;  %v2992_v40 = vadd.f32 %v2958_v15, %v648_v5  ;;  %v2112_v11 = vpop.f32.mrb[61].mxu0 }
 0x173   : > { %v2432_v34 = vpop.eup %2431  ;;  %1974 = vst [vmem:[%s2746_s13 + $0x50] sm:$0xff] %v1863_v56   ;;  %v986_v4 = vadd.f32 1.0, %v2430_v62  ;;  %2451 = vpow2.f32 %v1682_v46  ;;  %v651_v58 = vpop.f32.mrb[62].mxu0  ;;  %v1169_v18 = vmul.f32 %v2426_v51, %v2900_v17 }
 0x174   : > { %v2434_v30 = vpop.eup %2433  ;;  %1990 = vst [vmem:[%s2746_s13 + $0xd0] sm:$0xff] %v1943_v25   ;;  %2453 = vrcp.f32 %v1017_v63  ;;  %v1018_v1 = vadd.f32 1.0, %v2432_v34  ;;  %v1652_v44 = vmul.f32 -1.442695, %v2992_v40  ;;  %v2997_v61 = vadd.f32 %v2958_v15, %v651_v58  ;;  %v2113_v39 = vpop.f32.mrb[63].mxu0 }
 0x175   : > { %v2436_v6 = vpop.eup %2435  ;;  %2455 = vrcp.f32 %v986_v4  ;;  %v987_v10 = vadd.f32 1.0, %v2434_v30 }
 0x176   : > { %v2438_v42 = vpop.eup %2437  ;;  %2457 = vrcp.f32 %v1018_v1  ;;  %v1019_v13 = vadd.f32 1.0, %v2436_v6  ;;  %v1653_v57 = vmul.f32 -1.442695, %v2997_v61 }
 0x177   : > { %v2440_v14 = vpop.eup %2439  ;;  %2459 = vrcp.f32 %v987_v10  ;;  %v1201_v52 = vmul.f32 %v2438_v42, %v2908_v54 }
 0x178   : > { %v2442_v48 = vpop.eup %2441  ;;  %v1170_v19 = vmul.f32 %v2440_v14, %v2911_v22  ;;  %2461 = vrcp.f32 %v1019_v13 }
 0x179   : > { %v2444_v20 = vpop.eup %2443  ;;  %v1202_v31 = vmul.f32 %v2442_v48, %v2914_v3  ;;  %2463 = vpow2.f32 %v1651_v41 }
 0x17a   : > { %v2446_v16 = vpop.eup %2445  ;;  %v1868_v15 = vpack.c.bf16 %v1170_v19, %v1169_v18  ;;  %2465 = vpow2.f32 %v1683_v27  ;;  %v1171_v12 = vmul.f32 %v2444_v20, %v2922_v47 }
 0x17b   : > { %v2448_v7 = vpop.eup %2447  ;;  %v1948_v33 = vpack.c.bf16 %v1202_v31, %v1201_v52  ;;  %v988_v28 = vadd.f32 1.0, %v2446_v16  ;;  %2467 = vpow2.f32 %v1652_v44 }
 0x17c   : > { %v2450_v17 = vpop.eup %2449  ;;  %1975 = vst [vmem:[%s2746_s13 + $0x58] sm:$0xff] %v1868_v15   ;;  %v1020_v22 = vadd.f32 1.0, %v2448_v7  ;;  %2469 = vpow2.f32 %v1653_v57 }
 0x17d   : > { %v2452_v36 = vpop.eup %2451  ;;  %1991 = vst [vmem:[%s2746_s13 + $0xd8] sm:$0xff] %v1948_v33   ;;  %2471 = vrcp.f32 %v988_v28  ;;  %v989_v53 = vadd.f32 1.0, %v2450_v17 }
 0x17e   : > { %v2454_v54 = vpop.eup %2453  ;;  %2473 = vrcp.f32 %v1020_v22  ;;  %v1021_v49 = vadd.f32 1.0, %v2452_v36 }
 0x17f   : > { %v2456_v3 = vpop.eup %2455  ;;  %v1203_v45 = vmul.f32 %v2454_v54, %v2928_v23  ;;  %2475 = vrcp.f32 %v989_v53 }
 0x180   : > { %v2458_v60 = vpop.eup %2457  ;;  %v1172_v37 = vmul.f32 %v2456_v3, %v2933_v32  ;;  %2477 = vrcp.f32 %v1021_v49 }
 0x181   : > { %v2460_v2 = vpop.eup %2459  ;;  %v1204_v46 = vmul.f32 %v2458_v60, %v2936_v35 }
 0x182   : > { %v2462_v50 = vpop.eup %2461  ;;  %v1873_v51 = vpack.c.bf16 %v1172_v37, %v1171_v12  ;;  %v1173_v34 = vmul.f32 %v2460_v2, %v2944_v9 }
 0x183   : > { %v2464_v55 = vpop.eup %2463  ;;  %v1953_v8 = vpack.c.bf16 %v1204_v46, %v1203_v45  ;;  %v1205_v30 = vmul.f32 %v2462_v50, %v2947_v26 }
 0x184   : > { %v2466_v59 = vpop.eup %2465  ;;  %1976 = vst [vmem:[%s2746_s13 + $0x60] sm:$0xff] %v1873_v51   ;;  %v990_v56 = vadd.f32 1.0, %v2464_v55 }
 0x185   : > { %v2468_v62 = vpop.eup %2467  ;;  %1992 = vst [vmem:[%s2746_s13 + $0xe0] sm:$0xff] %v1953_v8   ;;  %v1022_v47 = vadd.f32 1.0, %v2466_v59 }
 0x186   : > { %v2470_v32 = vpop.eup %2469  ;;  %2479 = vrcp.f32 %v990_v56  ;;  %v991_v23 = vadd.f32 1.0, %v2468_v62 }
 0x187   : > { %v2472_v25 = vpop.eup %2471  ;;  %2481 = vrcp.f32 %v1022_v47  ;;  %v992_v35 = vadd.f32 1.0, %v2470_v32 }
 0x188   : > { %v2474_v63 = vpop.eup %2473  ;;  %v1174_v4 = vmul.f32 %v2472_v25, %v2961_v24  ;;  %2483 = vrcp.f32 %v991_v23 }
 0x189   : > { %v1206_v1 = vmul.f32 %v2474_v63, %v2964_v29  ;;  %2485 = vrcp.f32 %v992_v35  ;;  %v2476_v10 = vpop.eup %2475 }
 0x18a   : > { %v1878_v5 = vpack.c.bf16 %v1174_v4, %v1173_v34  ;;  %v2478_v41 = vpop.eup %2477  ;;  %v1175_v9 = vmul.f32 %v2476_v10, %v2971_v38 }
 0x18b   : > { %v1958_v6 = vpack.c.bf16 %v1206_v1, %v1205_v30  ;;  %v1207_v26 = vmul.f32 %v2478_v41, %v2974_v21 }
 0x18c   : > { %1977 = vst [vmem:[%s2746_s13 + $0x68] sm:$0xff] %v1878_v5  }
 0x18d   : > { %1993 = vst [vmem:[%s2746_s13 + $0xe8] sm:$0xff] %v1958_v6  }
 0x190   : > { %v2480_v11 = vpop.eup %2479 }
 0x191   : > { %v2482_v42 = vpop.eup %2481  ;;  %v1176_v24 = vmul.f32 %v2480_v11, %v2983_v43 }
 0x192   : > { %v2484_v13 = vpop.eup %2483  ;;  %v1208_v29 = vmul.f32 %v2482_v42, %v2986_v0 }
 0x193   : > { %v2486_v27 = vpop.eup %2485  ;;  %v1883_v58 = vpack.c.bf16 %v1176_v24, %v1175_v9  ;;  %v1177_v44 = vmul.f32 %v2484_v13, %v2992_v40 }
 0x194   : > { %v1963_v14 = vpack.c.bf16 %v1208_v29, %v1207_v26  ;;  %v1178_v39 = vmul.f32 %v2486_v27, %v2997_v61 }
 0x195   : > { %1978 = vst [vmem:[%s2746_s13 + $0x70] sm:$0xff] %v1883_v58  }
 0x196   : > { %1994 = vst [vmem:[%s2746_s13 + $0xf0] sm:$0xff] %v1963_v14   ;;  %v1888_v48 = vpack.c.bf16 %v1178_v39, %v1177_v44 }
 0x198   : > { %1979 = vst [vmem:[%s2746_s13 + $0x78] sm:$0xff] %v1888_v48  }
 0x199 PF: > { %s13_s12 = sadd.s32 1, %s2494_s12  }
 0x19a   : > { %p10_p4 = scmp.ge.s32.totalorder %s13_s12, 23  }
 0x19c   :  { %12 = sbr.rel (!%p10_p4) target bundleno = 1 (0x1), region = 62 }

</bundles_post_ra>
